<compile_context>
chip_gen: v6e
topology: v6e:2x2x1
jax: 0.10.0
libtpu: 0.0.40
codegen_flags: <defaults>
</compile_context>

<pallas_src>
import jax
import jax.numpy as jnp
from jax.experimental import pallas as pl
from jax.experimental.pallas import tpu as pltpu


def _round_up(x, m):
    return (x + m - 1) // m * m


# Above v5e's 16 MiB scoped default; well below physical VMEM on all chips.
_VMEM_LIMIT = 32 * 1024 * 1024


# ----------------------------------------------------------------------------
# Kernel A: sequential tanh-RNN recurrence (TB steps per grid invocation).
# ----------------------------------------------------------------------------
def _make_recurrence_kernel(hp, tb):
    """hp = lane-padded hidden size (multiple of 128), tb = time steps / chunk."""

    def kernel(tok_ref,    # (Tp,)      int32 SMEM  scalar-prefetched token ids
               emb_ref,    # (V, 1, Hp) bf16        relu(embedding) table (resident)
               h0_ref,     # (1, Hp)    f32         initial hidden state
               wc_ref,     # (2Hp, Hp)  bf16        fused [W_ih ; W_hh]    (resident)
               bc_ref,     # (1, Hp)    f32         b_ih + b_hh
               hs_ref,     # (TB, Hp)   f32         hidden states of this chunk (out)
               xh_ref):    # (1, 2Hp)   bf16        VMEM scratch: fused [x | h] row
        c = pl.program_id(0)

        @pl.when(c == 0)
        def _():
            xh_ref[:, hp:] = h0_ref[...].astype(jnp.bfloat16)

        base = c * tb
        # Hoist the resident weights into vregs for the whole unrolled loop.
        wc = wc_ref[...]
        bc = bc_ref[...]

        # Statically unrolled time loop: static row indices give aligned,
        # unmasked sublane stores into hs_ref; only the token id is dynamic
        # (SMEM scalar read + leading-dim gather from the resident table).
        for i in range(tb):
            xh_ref[:, :hp] = emb_ref[tok_ref[base + i]]      # relu'd bf16 row
            # Fused cell: h' = tanh([x | h] @ [W_ih ; W_hh] + (b_ih + b_hh)).
            pre = jnp.dot(xh_ref[...], wc,
                          preferred_element_type=jnp.float32) + bc
            h = jnp.tanh(pre)                                 # (1, Hp) f32
            xh_ref[:, hp:] = h.astype(jnp.bfloat16)           # carry to next step
            hs_ref[pl.ds(i, 1), :] = h

    return kernel


# ----------------------------------------------------------------------------
# Kernel B: batched output projection + log-softmax (parallel over time tiles).
# ----------------------------------------------------------------------------
def _projection_kernel(hs_ref, wo_ref, bo_ref, logp_ref):
    # (TB, Hp) @ (Hp, Vp): batched over time -> M = TB rows on the MXU.
    h = hs_ref[...].astype(jnp.bfloat16)
    logits = jnp.dot(h, wo_ref[...],
                     preferred_element_type=jnp.float32) + bo_ref[...]
    # Pad vocab lanes carry a -1e9 bias => exp == 0 => reductions unchanged.
    m = jnp.max(logits, axis=-1, keepdims=True)
    z = logits - m
    lse = jnp.log(jnp.sum(jnp.exp(z), axis=-1, keepdims=True))
    logp_ref[...] = z - lse


# ----------------------------------------------------------------------------
# Wrapper
# ----------------------------------------------------------------------------
def decoder_rnn_decode(tokens, hn, params, time_block=None):
    """Run T teacher-forced decoder steps (two pallas_calls total).

    tokens : (T,) int32 token ids
    hn     : (1, 1, H) f32 initial hidden state
    returns: (logp (T, V), hn (1, 1, H))
    """
    emb_p = params["embedding_p"]        # (V, 1, Hp) bf16  relu pre-applied
    wc = params["w_cell_t"]              # (2Hp, Hp)  bf16
    bc = params["b_cell"]                # (1, Hp)    f32
    wo = params["w_out_t_p"]             # (Hp, Vp)   bf16
    bo = params["b_out_p"]               # (1, Vp)    f32  (-1e9 on pad lanes)

    H = params["w_ih_t"].shape[0]
    V = params["w_out_t"].shape[1]
    Hp = wc.shape[1]
    Vp = wo.shape[1]
    Vemb = emb_p.shape[0]
    T = tokens.shape[0]

    tb = time_block or min(32, _round_up(T, 8))
    Tp = _round_up(T, tb)
    nchunks = Tp // tb

    tokens_p = jnp.pad(tokens.astype(jnp.int32), (0, Tp - T))   # pad token = 0
    h0 = jnp.zeros((1, Hp), jnp.float32).at[:, :H].set(
        hn.reshape(1, H).astype(jnp.float32))

    # ---- Kernel A: recurrence over all time chunks (sequential) -------------
    hs = pl.pallas_call(
        _make_recurrence_kernel(Hp, tb),
        out_shape=jax.ShapeDtypeStruct((Tp, Hp), jnp.float32),
        grid_spec=pltpu.PrefetchScalarGridSpec(
            num_scalar_prefetch=1,
            grid=(nchunks,),
            in_specs=[
                # constant index maps -> fetched once, VMEM-resident
                pl.BlockSpec((Vemb, 1, Hp), lambda c, tok: (0, 0, 0)),
                pl.BlockSpec((1, Hp), lambda c, tok: (0, 0)),
                pl.BlockSpec((2 * Hp, Hp), lambda c, tok: (0, 0)),
                pl.BlockSpec((1, Hp), lambda c, tok: (0, 0)),
            ],
            out_specs=pl.BlockSpec((tb, Hp), lambda c, tok: (c, 0)),
            scratch_shapes=[pltpu.VMEM((1, 2 * Hp), jnp.bfloat16)],
        ),
        compiler_params=pltpu.CompilerParams(
            # NOTE: must stay "arbitrary" — the hidden-state carry in the
            # xh scratch requires strictly sequential chunk execution.
            dimension_semantics=("arbitrary",),
            vmem_limit_bytes=_VMEM_LIMIT),
    )(tokens_p, emb_p, h0, wc, bc)

    # ---- Kernel B: batched projection + log-softmax (parallel over T) -------
    logp_p = pl.pallas_call(
        _projection_kernel,
        out_shape=jax.ShapeDtypeStruct((Tp, Vp), jnp.float32),
        grid_spec=pltpu.PrefetchScalarGridSpec(
            num_scalar_prefetch=0,
            grid=(nchunks,),
            in_specs=[
                pl.BlockSpec((tb, Hp), lambda i: (i, 0)),
                pl.BlockSpec((Hp, Vp), lambda i: (0, 0)),
                pl.BlockSpec((1, Vp), lambda i: (0, 0)),
            ],
            out_specs=pl.BlockSpec((tb, Vp), lambda i: (i, 0)),
        ),
        compiler_params=pltpu.CompilerParams(
            dimension_semantics=("parallel",),   # rows independent -> megacore
            vmem_limit_bytes=_VMEM_LIMIT),
    )(hs, wo, bo)

    logp = logp_p[:T, :V]
    hn_out = hs[T - 1, :H].reshape(1, 1, H)
    return logp, hn_out


def decoder_rnn_step(token_id, hn, params):
    """Single decoder step == the PyTorch module's forward(x, hn)."""
    tokens = jnp.asarray(token_id, jnp.int32).reshape(1)
    logp, hn_out = decoder_rnn_decode(tokens, hn, params)
    return logp, hn_out   # (1, V), (1, 1, H)


def init_params(key, hidden_size, output_size):
    ks = jax.random.split(key, 7)
    s = 0.1
    H, V = hidden_size, output_size

    # Unpadded f32 parameters (also used by the pure-JAX reference).
    emb = s * jax.random.normal(ks[0], (V, H), jnp.float32)          # nn.Embedding
    w_ih = s * jax.random.normal(ks[1], (H, H), jnp.float32)         # stored (in, out)
    w_hh = s * jax.random.normal(ks[2], (H, H), jnp.float32)
    b_ih = s * jax.random.normal(ks[3], (1, H), jnp.float32)
    b_hh = s * jax.random.normal(ks[4], (1, H), jnp.float32)
    w_out = s * jax.random.normal(ks[5], (H, V), jnp.float32)        # stored (H, V)
    b_out = s * jax.random.normal(ks[6], (1, V), jnp.float32)

    # Kernel-side parameters: lane-padded to 128, fused cell weights, bf16.
    Hp = _round_up(H, 128)
    Vp = _round_up(V, 128)

    # ReLU pre-applied + bf16 table: halves table bytes and removes a per-step
    # VPU relu + f32->bf16 cast from the recurrence latency chain (the matmul
    # consumes bf16 inputs anyway; tanh / log-softmax stay f32 in-kernel).
    emb_relu = jnp.maximum(emb, 0.0)
    emb_p = jnp.zeros((V, 1, Hp), jnp.float32).at[:, 0, :H].set(emb_relu)
    w_cell = jnp.zeros((2 * Hp, Hp), jnp.float32)
    w_cell = w_cell.at[:H, :H].set(w_ih).at[Hp:Hp + H, :H].set(w_hh)
    b_cell = jnp.zeros((1, Hp), jnp.float32).at[:, :H].set(b_ih + b_hh)
    w_out_p = jnp.zeros((Hp, Vp), jnp.float32).at[:H, :V].set(w_out)
    b_out_p = jnp.full((1, Vp), -1e9, jnp.float32).at[:, :V].set(b_out)

    return {
        # reference / logical parameters
        "embedding": emb, "w_ih_t": w_ih, "w_hh_t": w_hh,
        "b_ih": b_ih, "b_hh": b_hh, "w_out_t": w_out, "b_out": b_out,
        # kernel parameters
        "embedding_p": emb_p.astype(jnp.bfloat16),
        "w_cell_t": w_cell.astype(jnp.bfloat16),
        "b_cell": b_cell,
        "w_out_t_p": w_out_p.astype(jnp.bfloat16),
        "b_out_p": b_out_p,
    }


def _reference_decode(tokens, hn, params):
    """Pure-JAX f32 reference of the PyTorch module, stepped over `tokens`."""
    H = params["w_ih_t"].shape[0]
    h = hn.reshape(1, H)
    logps = []
    for tok in tokens:
        x = jnp.maximum(params["embedding"][tok].reshape(1, H), 0.0)
        h = jnp.tanh(x @ params["w_ih_t"] + params["b_ih"]
                     + h @ params["w_hh_t"] + params["b_hh"])
        logits = h @ params["w_out_t"] + params["b_out"]
        logps.append(jax.nn.log_softmax(logits, axis=1))
    return jnp.concatenate(logps, axis=0), h.reshape(1, 1, H)


if __name__ == "__main__":
    hidden_size = 32
    output_size = 64   # vocab size
    seq_len = 8

    key = jax.random.PRNGKey(0)
    kp, kh, kt = jax.random.split(key, 3)
    params = init_params(kp, hidden_size, output_size)
    hn0 = 0.1 * jax.random.normal(kh, (1, 1, hidden_size), jnp.float32)
    tokens = jax.random.randint(kt, (seq_len,), 0, output_size, jnp.int32)

    # Multi-step decode: recurrence kernel + batched projection kernel.
    logp_seq, hn_seq = decoder_rnn_decode(tokens, hn0, params)
    jax.block_until_ready((logp_seq, hn_seq))

    logp_ref, hn_ref = _reference_decode(tokens, hn0, params)
    assert logp_seq.shape == (seq_len, output_size)
    assert hn_seq.shape == (1, 1, hidden_size)
    # bf16 weights in the kernel vs f32 reference -> loose-ish tolerance.
    assert jnp.allclose(logp_seq, logp_ref, atol=2e-2), \
        float(jnp.max(jnp.abs(logp_seq - logp_ref)))
    assert jnp.allclose(hn_seq, hn_ref, atol=2e-2), \
        float(jnp.max(jnp.abs(hn_seq - hn_ref)))

    # Single-step API, identical signature/semantics to the module's forward.
    logp1, hn1 = decoder_rnn_step(tokens[0], hn0, params)
    jax.block_until_ready((logp1, hn1))
    l1_ref, h1_ref = _reference_decode(tokens[:1], hn0, params)
    assert logp1.shape == (1, output_size) and hn1.shape == (1, 1, hidden_size)
    assert jnp.allclose(logp1, l1_ref, atol=2e-2)
    assert jnp.allclose(hn1, h1_ref, atol=2e-2)

    print("KERNEL_OK")
</pallas_src>

<mosaic_0001>
module attributes {stable_mosaic.version = 11 : i64} {
  func.func @kernel(%arg0: i32, %arg1: memref<8xi32, #tpu.memory_space<smem>>, %arg2: memref<64x1x128xbf16, #tpu.memory_space<vmem>>, %arg3: memref<1x128xf32, #tpu.memory_space<vmem>>, %arg4: memref<256x128xbf16, #tpu.memory_space<vmem>>, %arg5: memref<1x128xf32, #tpu.memory_space<vmem>>, %arg6: memref<8x128xf32, #tpu.memory_space<vmem>>, %arg7: memref<1x256xbf16, #tpu.memory_space<vmem>>) attributes {dimension_semantics = [#tpu.dimension_semantics<arbitrary>], iteration_bounds = array<i64: 1>, scalar_prefetch = 1 : i64, scratch_operands = 1 : i64, tpu.core_type = #tpu.core_type<tc>, window_params = [{pipeline_mode = #tpu.pipeline_mode<synchronous>, transform_indices = @transform_0, window_bounds = array<i64: 64, 1, 128>}, {pipeline_mode = #tpu.pipeline_mode<synchronous>, transform_indices = @transform_1, window_bounds = array<i64: 1, 128>}, {pipeline_mode = #tpu.pipeline_mode<synchronous>, transform_indices = @transform_2, window_bounds = array<i64: 256, 128>}, {pipeline_mode = #tpu.pipeline_mode<synchronous>, transform_indices = @transform_3, window_bounds = array<i64: 1, 128>}, {transform_indices = @transform_4, window_bounds = array<i64: 8, 128>}]} {
    %c0_i32 = arith.constant 0 : i32
    %0 = arith.cmpi eq, %arg0, %c0_i32 : i32
    %1 = arith.extui %0 : i1 to i32
    %c0_i32_0 = arith.constant 0 : i32
    %2 = arith.cmpi ne, %1, %c0_i32_0 : i32
    scf.if %2 {
      %c0_84 = arith.constant 0 : index
      %c0_85 = arith.constant 0 : index
      %118 = vector.load %arg3[%c0_84, %c0_85] : memref<1x128xf32, #tpu.memory_space<vmem>>, vector<1x128xf32>
      %119 = arith.truncf %118 : vector<1x128xf32> to vector<1x128xbf16>
      %c0_86 = arith.constant 0 : index
      %c128_87 = arith.constant 128 : index
      %120 = vector.load %arg7[%c0_86, %c128_87] : memref<1x256xbf16, #tpu.memory_space<vmem>>, vector<1x128xbf16>
      tpu.vector_store %arg7[%c0_86, %c128_87], %119 {strides = array<i32>} : memref<1x256xbf16, #tpu.memory_space<vmem>>, vector<1x128xbf16>,
    } else {
    }
    %c8_i32 = arith.constant 8 : i32
    %3 = arith.muli %arg0, %c8_i32 : i32
    %c0 = arith.constant 0 : index
    %c0_1 = arith.constant 0 : index
    %4 = vector.load %arg4[%c0, %c0_1] : memref<256x128xbf16, #tpu.memory_space<vmem>>, vector<256x128xbf16>
    %c0_2 = arith.constant 0 : index
    %c0_3 = arith.constant 0 : index
    %5 = vector.load %arg5[%c0_2, %c0_3] : memref<1x128xf32, #tpu.memory_space<vmem>>, vector<1x128xf32>
    %c0_i32_4 = arith.constant 0 : i32
    %6 = arith.addi %3, %c0_i32_4 : i32
    %7 = arith.index_cast %6 : i32 to index
    %8 = memref.load %arg1[%7] : memref<8xi32, #tpu.memory_space<smem>>
    %9 = arith.index_cast %8 : i32 to index
    %c0_5 = arith.constant 0 : index
    %c0_6 = arith.constant 0 : index
    %10 = vector.load %arg2[%9, %c0_5, %c0_6] : memref<64x1x128xbf16, #tpu.memory_space<vmem>>, vector<1x1x128xbf16>
    %11 = vector.shape_cast %10 : vector<1x1x128xbf16> to vector<1x128xbf16>
    %c0_7 = arith.constant 0 : index
    %c0_8 = arith.constant 0 : index
    %12 = vector.load %arg7[%c0_7, %c0_8] : memref<1x256xbf16, #tpu.memory_space<vmem>>, vector<1x128xbf16>
    tpu.vector_store %arg7[%c0_7, %c0_8], %11 {strides = array<i32>} : memref<1x256xbf16, #tpu.memory_space<vmem>>, vector<1x128xbf16>,
    %c0_9 = arith.constant 0 : index
    %c0_10 = arith.constant 0 : index
    %13 = vector.load %arg7[%c0_9, %c0_10] : memref<1x256xbf16, #tpu.memory_space<vmem>>, vector<1x256xbf16>
    %cst = arith.constant dense<0.000000e+00> : vector<1x128xf32>
    %14 = tpu.matmul %13, %4, %cst {dimension_numbers = #tpu.dot_dimension_numbers<[1], [0], [0], [1], [0, 0, 1, 1], [], []>} : vector<1x256xbf16>, vector<256x128xbf16>, vector<1x128xf32> -> vector<1x128xf32>
    %15 = arith.addf %14, %5 : vector<1x128xf32>
    %16 = math.tanh %15 : vector<1x128xf32>
    %17 = arith.truncf %16 : vector<1x128xf32> to vector<1x128xbf16>
    %c0_11 = arith.constant 0 : index
    %c128 = arith.constant 128 : index
    %18 = vector.load %arg7[%c0_11, %c128] : memref<1x256xbf16, #tpu.memory_space<vmem>>, vector<1x128xbf16>
    tpu.vector_store %arg7[%c0_11, %c128], %17 {strides = array<i32>} : memref<1x256xbf16, #tpu.memory_space<vmem>>, vector<1x128xbf16>,
    %c0_12 = arith.constant 0 : index
    %c0_13 = arith.constant 0 : index
    %19 = vector.load %arg6[%c0_12, %c0_13] : memref<8x128xf32, #tpu.memory_space<vmem>>, vector<1x128xf32>
    tpu.vector_store %arg6[%c0_12, %c0_13], %16 {strides = array<i32>} : memref<8x128xf32, #tpu.memory_space<vmem>>, vector<1x128xf32>,
    %c1_i32 = arith.constant 1 : i32
    %20 = arith.addi %3, %c1_i32 : i32
    %21 = arith.index_cast %20 : i32 to index
    %22 = memref.load %arg1[%21] : memref<8xi32, #tpu.memory_space<smem>>
    %23 = arith.index_cast %22 : i32 to index
    %c0_14 = arith.constant 0 : index
    %c0_15 = arith.constant 0 : index
    %24 = vector.load %arg2[%23, %c0_14, %c0_15] : memref<64x1x128xbf16, #tpu.memory_space<vmem>>, vector<1x1x128xbf16>
    %25 = vector.shape_cast %24 : vector<1x1x128xbf16> to vector<1x128xbf16>
    %c0_16 = arith.constant 0 : index
    %c0_17 = arith.constant 0 : index
    %26 = vector.load %arg7[%c0_16, %c0_17] : memref<1x256xbf16, #tpu.memory_space<vmem>>, vector<1x128xbf16>
    tpu.vector_store %arg7[%c0_16, %c0_17], %25 {strides = array<i32>} : memref<1x256xbf16, #tpu.memory_space<vmem>>, vector<1x128xbf16>,
    %c0_18 = arith.constant 0 : index
    %c0_19 = arith.constant 0 : index
    %27 = vector.load %arg7[%c0_18, %c0_19] : memref<1x256xbf16, #tpu.memory_space<vmem>>, vector<1x256xbf16>
    %cst_20 = arith.constant dense<0.000000e+00> : vector<1x128xf32>
    %28 = tpu.matmul %27, %4, %cst_20 {dimension_numbers = #tpu.dot_dimension_numbers<[1], [0], [0], [1], [0, 0, 1, 1], [], []>} : vector<1x256xbf16>, vector<256x128xbf16>, vector<1x128xf32> -> vector<1x128xf32>
    %29 = arith.addf %28, %5 : vector<1x128xf32>
    %30 = math.tanh %29 : vector<1x128xf32>
    %31 = arith.truncf %30 : vector<1x128xf32> to vector<1x128xbf16>
    %c0_21 = arith.constant 0 : index
    %c128_22 = arith.constant 128 : index
    %32 = vector.load %arg7[%c0_21, %c128_22] : memref<1x256xbf16, #tpu.memory_space<vmem>>, vector<1x128xbf16>
    tpu.vector_store %arg7[%c0_21, %c128_22], %31 {strides = array<i32>} : memref<1x256xbf16, #tpu.memory_space<vmem>>, vector<1x128xbf16>,
    %c1 = arith.constant 1 : index
    %c0_23 = arith.constant 0 : index
    %33 = vector.load %arg6[%c1, %c0_23] : memref<8x128xf32, #tpu.memory_space<vmem>>, vector<1x128xf32>
    tpu.vector_store %arg6[%c1, %c0_23], %30 {strides = array<i32>} : memref<8x128xf32, #tpu.memory_space<vmem>>, vector<1x128xf32>,
    %c2_i32 = arith.constant 2 : i32
    %34 = arith.addi %3, %c2_i32 : i32
    %35 = arith.index_cast %34 : i32 to index
    %36 = memref.load %arg1[%35] : memref<8xi32, #tpu.memory_space<smem>>
    %37 = arith.index_cast %36 : i32 to index
    %c0_24 = arith.constant 0 : index
    %c0_25 = arith.constant 0 : index
    %38 = vector.load %arg2[%37, %c0_24, %c0_25] : memref<64x1x128xbf16, #tpu.memory_space<vmem>>, vector<1x1x128xbf16>
    %39 = vector.shape_cast %38 : vector<1x1x128xbf16> to vector<1x128xbf16>
    %c0_26 = arith.constant 0 : index
    %c0_27 = arith.constant 0 : index
    %40 = vector.load %arg7[%c0_26, %c0_27] : memref<1x256xbf16, #tpu.memory_space<vmem>>, vector<1x128xbf16>
    tpu.vector_store %arg7[%c0_26, %c0_27], %39 {strides = array<i32>} : memref<1x256xbf16, #tpu.memory_space<vmem>>, vector<1x128xbf16>,
    %c0_28 = arith.constant 0 : index
    %c0_29 = arith.constant 0 : index
    %41 = vector.load %arg7[%c0_28, %c0_29] : memref<1x256xbf16, #tpu.memory_space<vmem>>, vector<1x256xbf16>
    %cst_30 = arith.constant dense<0.000000e+00> : vector<1x128xf32>
    %42 = tpu.matmul %41, %4, %cst_30 {dimension_numbers = #tpu.dot_dimension_numbers<[1], [0], [0], [1], [0, 0, 1, 1], [], []>} : vector<1x256xbf16>, vector<256x128xbf16>, vector<1x128xf32> -> vector<1x128xf32>
    %43 = arith.addf %42, %5 : vector<1x128xf32>
    %44 = math.tanh %43 : vector<1x128xf32>
    %45 = arith.truncf %44 : vector<1x128xf32> to vector<1x128xbf16>
    %c0_31 = arith.constant 0 : index
    %c128_32 = arith.constant 128 : index
    %46 = vector.load %arg7[%c0_31, %c128_32] : memref<1x256xbf16, #tpu.memory_space<vmem>>, vector<1x128xbf16>
    tpu.vector_store %arg7[%c0_31, %c128_32], %45 {strides = array<i32>} : memref<1x256xbf16, #tpu.memory_space<vmem>>, vector<1x128xbf16>,
    %c2 = arith.constant 2 : index
    %c0_33 = arith.constant 0 : index
    %47 = vector.load %arg6[%c2, %c0_33] : memref<8x128xf32, #tpu.memory_space<vmem>>, vector<1x128xf32>
    tpu.vector_store %arg6[%c2, %c0_33], %44 {strides = array<i32>} : memref<8x128xf32, #tpu.memory_space<vmem>>, vector<1x128xf32>,
    %c3_i32 = arith.constant 3 : i32
    %48 = arith.addi %3, %c3_i32 : i32
    %49 = arith.index_cast %48 : i32 to index
    %50 = memref.load %arg1[%49] : memref<8xi32, #tpu.memory_space<smem>>
    %51 = arith.index_cast %50 : i32 to index
    %c0_34 = arith.constant 0 : index
    %c0_35 = arith.constant 0 : index
    %52 = vector.load %arg2[%51, %c0_34, %c0_35] : memref<64x1x128xbf16, #tpu.memory_space<vmem>>, vector<1x1x128xbf16>
    %53 = vector.shape_cast %52 : vector<1x1x128xbf16> to vector<1x128xbf16>
    %c0_36 = arith.constant 0 : index
    %c0_37 = arith.constant 0 : index
    %54 = vector.load %arg7[%c0_36, %c0_37] : memref<1x256xbf16, #tpu.memory_space<vmem>>, vector<1x128xbf16>
    tpu.vector_store %arg7[%c0_36, %c0_37], %53 {strides = array<i32>} : memref<1x256xbf16, #tpu.memory_space<vmem>>, vector<1x128xbf16>,
    %c0_38 = arith.constant 0 : index
    %c0_39 = arith.constant 0 : index
    %55 = vector.load %arg7[%c0_38, %c0_39] : memref<1x256xbf16, #tpu.memory_space<vmem>>, vector<1x256xbf16>
    %cst_40 = arith.constant dense<0.000000e+00> : vector<1x128xf32>
    %56 = tpu.matmul %55, %4, %cst_40 {dimension_numbers = #tpu.dot_dimension_numbers<[1], [0], [0], [1], [0, 0, 1, 1], [], []>} : vector<1x256xbf16>, vector<256x128xbf16>, vector<1x128xf32> -> vector<1x128xf32>
    %57 = arith.addf %56, %5 : vector<1x128xf32>
    %58 = math.tanh %57 : vector<1x128xf32>
    %59 = arith.truncf %58 : vector<1x128xf32> to vector<1x128xbf16>
    %c0_41 = arith.constant 0 : index
    %c128_42 = arith.constant 128 : index
    %60 = vector.load %arg7[%c0_41, %c128_42] : memref<1x256xbf16, #tpu.memory_space<vmem>>, vector<1x128xbf16>
    tpu.vector_store %arg7[%c0_41, %c128_42], %59 {strides = array<i32>} : memref<1x256xbf16, #tpu.memory_space<vmem>>, vector<1x128xbf16>,
    %c3 = arith.constant 3 : index
    %c0_43 = arith.constant 0 : index
    %61 = vector.load %arg6[%c3, %c0_43] : memref<8x128xf32, #tpu.memory_space<vmem>>, vector<1x128xf32>
    tpu.vector_store %arg6[%c3, %c0_43], %58 {strides = array<i32>} : memref<8x128xf32, #tpu.memory_space<vmem>>, vector<1x128xf32>,
    %c4_i32 = arith.constant 4 : i32
    %62 = arith.addi %3, %c4_i32 : i32
    %63 = arith.index_cast %62 : i32 to index
    %64 = memref.load %arg1[%63] : memref<8xi32, #tpu.memory_space<smem>>
    %65 = arith.index_cast %64 : i32 to index
    %c0_44 = arith.constant 0 : index
    %c0_45 = arith.constant 0 : index
    %66 = vector.load %arg2[%65, %c0_44, %c0_45] : memref<64x1x128xbf16, #tpu.memory_space<vmem>>, vector<1x1x128xbf16>
    %67 = vector.shape_cast %66 : vector<1x1x128xbf16> to vector<1x128xbf16>
    %c0_46 = arith.constant 0 : index
    %c0_47 = arith.constant 0 : index
    %68 = vector.load %arg7[%c0_46, %c0_47] : memref<1x256xbf16, #tpu.memory_space<vmem>>, vector<1x128xbf16>
    tpu.vector_store %arg7[%c0_46, %c0_47], %67 {strides = array<i32>} : memref<1x256xbf16, #tpu.memory_space<vmem>>, vector<1x128xbf16>,
    %c0_48 = arith.constant 0 : index
    %c0_49 = arith.constant 0 : index
    %69 = vector.load %arg7[%c0_48, %c0_49] : memref<1x256xbf16, #tpu.memory_space<vmem>>, vector<1x256xbf16>
    %cst_50 = arith.constant dense<0.000000e+00> : vector<1x128xf32>
    %70 = tpu.matmul %69, %4, %cst_50 {dimension_numbers = #tpu.dot_dimension_numbers<[1], [0], [0], [1], [0, 0, 1, 1], [], []>} : vector<1x256xbf16>, vector<256x128xbf16>, vector<1x128xf32> -> vector<1x128xf32>
    %71 = arith.addf %70, %5 : vector<1x128xf32>
    %72 = math.tanh %71 : vector<1x128xf32>
    %73 = arith.truncf %72 : vector<1x128xf32> to vector<1x128xbf16>
    %c0_51 = arith.constant 0 : index
    %c128_52 = arith.constant 128 : index
    %74 = vector.load %arg7[%c0_51, %c128_52] : memref<1x256xbf16, #tpu.memory_space<vmem>>, vector<1x128xbf16>
    tpu.vector_store %arg7[%c0_51, %c128_52], %73 {strides = array<i32>} : memref<1x256xbf16, #tpu.memory_space<vmem>>, vector<1x128xbf16>,
    %c4 = arith.constant 4 : index
    %c0_53 = arith.constant 0 : index
    %75 = vector.load %arg6[%c4, %c0_53] : memref<8x128xf32, #tpu.memory_space<vmem>>, vector<1x128xf32>
    tpu.vector_store %arg6[%c4, %c0_53], %72 {strides = array<i32>} : memref<8x128xf32, #tpu.memory_space<vmem>>, vector<1x128xf32>,
    %c5_i32 = arith.constant 5 : i32
    %76 = arith.addi %3, %c5_i32 : i32
    %77 = arith.index_cast %76 : i32 to index
    %78 = memref.load %arg1[%77] : memref<8xi32, #tpu.memory_space<smem>>
    %79 = arith.index_cast %78 : i32 to index
    %c0_54 = arith.constant 0 : index
    %c0_55 = arith.constant 0 : index
    %80 = vector.load %arg2[%79, %c0_54, %c0_55] : memref<64x1x128xbf16, #tpu.memory_space<vmem>>, vector<1x1x128xbf16>
    %81 = vector.shape_cast %80 : vector<1x1x128xbf16> to vector<1x128xbf16>
    %c0_56 = arith.constant 0 : index
    %c0_57 = arith.constant 0 : index
    %82 = vector.load %arg7[%c0_56, %c0_57] : memref<1x256xbf16, #tpu.memory_space<vmem>>, vector<1x128xbf16>
    tpu.vector_store %arg7[%c0_56, %c0_57], %81 {strides = array<i32>} : memref<1x256xbf16, #tpu.memory_space<vmem>>, vector<1x128xbf16>,
    %c0_58 = arith.constant 0 : index
    %c0_59 = arith.constant 0 : index
    %83 = vector.load %arg7[%c0_58, %c0_59] : memref<1x256xbf16, #tpu.memory_space<vmem>>, vector<1x256xbf16>
    %cst_60 = arith.constant dense<0.000000e+00> : vector<1x128xf32>
    %84 = tpu.matmul %83, %4, %cst_60 {dimension_numbers = #tpu.dot_dimension_numbers<[1], [0], [0], [1], [0, 0, 1, 1], [], []>} : vector<1x256xbf16>, vector<256x128xbf16>, vector<1x128xf32> -> vector<1x128xf32>
    %85 = arith.addf %84, %5 : vector<1x128xf32>
    %86 = math.tanh %85 : vector<1x128xf32>
    %87 = arith.truncf %86 : vector<1x128xf32> to vector<1x128xbf16>
    %c0_61 = arith.constant 0 : index
    %c128_62 = arith.constant 128 : index
    %88 = vector.load %arg7[%c0_61, %c128_62] : memref<1x256xbf16, #tpu.memory_space<vmem>>, vector<1x128xbf16>
    tpu.vector_store %arg7[%c0_61, %c128_62], %87 {strides = array<i32>} : memref<1x256xbf16, #tpu.memory_space<vmem>>, vector<1x128xbf16>,
    %c5 = arith.constant 5 : index
    %c0_63 = arith.constant 0 : index
    %89 = vector.load %arg6[%c5, %c0_63] : memref<8x128xf32, #tpu.memory_space<vmem>>, vector<1x128xf32>
    tpu.vector_store %arg6[%c5, %c0_63], %86 {strides = array<i32>} : memref<8x128xf32, #tpu.memory_space<vmem>>, vector<1x128xf32>,
    %c6_i32 = arith.constant 6 : i32
    %90 = arith.addi %3, %c6_i32 : i32
    %91 = arith.index_cast %90 : i32 to index
    %92 = memref.load %arg1[%91] : memref<8xi32, #tpu.memory_space<smem>>
    %93 = arith.index_cast %92 : i32 to index
    %c0_64 = arith.constant 0 : index
    %c0_65 = arith.constant 0 : index
    %94 = vector.load %arg2[%93, %c0_64, %c0_65] : memref<64x1x128xbf16, #tpu.memory_space<vmem>>, vector<1x1x128xbf16>
    %95 = vector.shape_cast %94 : vector<1x1x128xbf16> to vector<1x128xbf16>
    %c0_66 = arith.constant 0 : index
    %c0_67 = arith.constant 0 : index
    %96 = vector.load %arg7[%c0_66, %c0_67] : memref<1x256xbf16, #tpu.memory_space<vmem>>, vector<1x128xbf16>
    tpu.vector_store %arg7[%c0_66, %c0_67], %95 {strides = array<i32>} : memref<1x256xbf16, #tpu.memory_space<vmem>>, vector<1x128xbf16>,
    %c0_68 = arith.constant 0 : index
    %c0_69 = arith.constant 0 : index
    %97 = vector.load %arg7[%c0_68, %c0_69] : memref<1x256xbf16, #tpu.memory_space<vmem>>, vector<1x256xbf16>
    %cst_70 = arith.constant dense<0.000000e+00> : vector<1x128xf32>
    %98 = tpu.matmul %97, %4, %cst_70 {dimension_numbers = #tpu.dot_dimension_numbers<[1], [0], [0], [1], [0, 0, 1, 1], [], []>} : vector<1x256xbf16>, vector<256x128xbf16>, vector<1x128xf32> -> vector<1x128xf32>
    %99 = arith.addf %98, %5 : vector<1x128xf32>
    %100 = math.tanh %99 : vector<1x128xf32>
    %101 = arith.truncf %100 : vector<1x128xf32> to vector<1x128xbf16>
    %c0_71 = arith.constant 0 : index
    %c128_72 = arith.constant 128 : index
    %102 = vector.load %arg7[%c0_71, %c128_72] : memref<1x256xbf16, #tpu.memory_space<vmem>>, vector<1x128xbf16>
    tpu.vector_store %arg7[%c0_71, %c128_72], %101 {strides = array<i32>} : memref<1x256xbf16, #tpu.memory_space<vmem>>, vector<1x128xbf16>,
    %c6 = arith.constant 6 : index
    %c0_73 = arith.constant 0 : index
    %103 = vector.load %arg6[%c6, %c0_73] : memref<8x128xf32, #tpu.memory_space<vmem>>, vector<1x128xf32>
    tpu.vector_store %arg6[%c6, %c0_73], %100 {strides = array<i32>} : memref<8x128xf32, #tpu.memory_space<vmem>>, vector<1x128xf32>,
    %c7_i32 = arith.constant 7 : i32
    %104 = arith.addi %3, %c7_i32 : i32
    %105 = arith.index_cast %104 : i32 to index
    %106 = memref.load %arg1[%105] : memref<8xi32, #tpu.memory_space<smem>>
    %107 = arith.index_cast %106 : i32 to index
    %c0_74 = arith.constant 0 : index
    %c0_75 = arith.constant 0 : index
    %108 = vector.load %arg2[%107, %c0_74, %c0_75] : memref<64x1x128xbf16, #tpu.memory_space<vmem>>, vector<1x1x128xbf16>
    %109 = vector.shape_cast %108 : vector<1x1x128xbf16> to vector<1x128xbf16>
    %c0_76 = arith.constant 0 : index
    %c0_77 = arith.constant 0 : index
    %110 = vector.load %arg7[%c0_76, %c0_77] : memref<1x256xbf16, #tpu.memory_space<vmem>>, vector<1x128xbf16>
    tpu.vector_store %arg7[%c0_76, %c0_77], %109 {strides = array<i32>} : memref<1x256xbf16, #tpu.memory_space<vmem>>, vector<1x128xbf16>,
    %c0_78 = arith.constant 0 : index
    %c0_79 = arith.constant 0 : index
    %111 = vector.load %arg7[%c0_78, %c0_79] : memref<1x256xbf16, #tpu.memory_space<vmem>>, vector<1x256xbf16>
    %cst_80 = arith.constant dense<0.000000e+00> : vector<1x128xf32>
    %112 = tpu.matmul %111, %4, %cst_80 {dimension_numbers = #tpu.dot_dimension_numbers<[1], [0], [0], [1], [0, 0, 1, 1], [], []>} : vector<1x256xbf16>, vector<256x128xbf16>, vector<1x128xf32> -> vector<1x128xf32>
    %113 = arith.addf %112, %5 : vector<1x128xf32>
    %114 = math.tanh %113 : vector<1x128xf32>
    %115 = arith.truncf %114 : vector<1x128xf32> to vector<1x128xbf16>
    %c0_81 = arith.constant 0 : index
    %c128_82 = arith.constant 128 : index
    %116 = vector.load %arg7[%c0_81, %c128_82] : memref<1x256xbf16, #tpu.memory_space<vmem>>, vector<1x128xbf16>
    tpu.vector_store %arg7[%c0_81, %c128_82], %115 {strides = array<i32>} : memref<1x256xbf16, #tpu.memory_space<vmem>>, vector<1x128xbf16>,
    %c7 = arith.constant 7 : index
    %c0_83 = arith.constant 0 : index
    %117 = vector.load %arg6[%c7, %c0_83] : memref<8x128xf32, #tpu.memory_space<vmem>>, vector<1x128xf32>
    tpu.vector_store %arg6[%c7, %c0_83], %114 {strides = array<i32>} : memref<8x128xf32, #tpu.memory_space<vmem>>, vector<1x128xf32>,
    return
  }
  func.func @transform_0(%arg0: i32, %arg1: memref<8xi32, #tpu.memory_space<smem>>) -> (i32, i32, i32) {
    %c0_i32 = arith.constant 0 : i32
    %c0_i32_0 = arith.constant 0 : i32
    %c0_i32_1 = arith.constant 0 : i32
    %c0_i32_2 = arith.constant 0 : i32
    return %c0_i32, %c0_i32_0, %c0_i32_1 : i32, i32, i32
  }
  func.func @transform_1(%arg0: i32, %arg1: memref<8xi32, #tpu.memory_space<smem>>) -> (i32, i32) {
    %c0_i32 = arith.constant 0 : i32
    %c0_i32_0 = arith.constant 0 : i32
    %c0_i32_1 = arith.constant 0 : i32
    return %c0_i32, %c0_i32_0 : i32, i32
  }
  func.func @transform_2(%arg0: i32, %arg1: memref<8xi32, #tpu.memory_space<smem>>) -> (i32, i32) {
    %c0_i32 = arith.constant 0 : i32
    %c0_i32_0 = arith.constant 0 : i32
    %c0_i32_1 = arith.constant 0 : i32
    return %c0_i32, %c0_i32_0 : i32, i32
  }
  func.func @transform_3(%arg0: i32, %arg1: memref<8xi32, #tpu.memory_space<smem>>) -> (i32, i32) {
    %c0_i32 = arith.constant 0 : i32
    %c0_i32_0 = arith.constant 0 : i32
    %c0_i32_1 = arith.constant 0 : i32
    return %c0_i32, %c0_i32_0 : i32, i32
  }
  func.func @transform_4(%arg0: i32, %arg1: memref<8xi32, #tpu.memory_space<smem>>) -> (i32, i32) {
    %c0_i32 = arith.constant 0 : i32
    %c0_i32_0 = arith.constant 0 : i32
    return %arg0, %c0_i32 : i32, i32
  }
}

</mosaic_0001>

<bundles_post_ra>
// kernel: tpu_custom_call.1
= control target key start
LH: loop header
LB: loop body
LE: loop exit
PB: predicated region body
PF: predicated region fallthrough
CT: control target
= control target key end

     0   :  { %s1443_s0 = inlined_call_operand.vmem [shape: s32[8], index: 0, kind: input, shape index: {}]   ;;  %s1444_s1 = inlined_call_operand.vmem [shape: bf16[64,1,128], index: 1, kind: input, shape index: {}]   ;;  %s1445_s2 = inlined_call_operand.vmem [shape: f32[1,128], index: 2, kind: input, shape index: {}]   ;;  %s1446_s3 = inlined_call_operand.hbm [shape: bf16[256,128], index: 3, kind: input, shape index: {}]   ;;  %s1447_s4 = inlined_call_operand.vmem [shape: f32[1,128], index: 4, kind: input, shape index: {}]   ;;  %s1448_s5 = inlined_call_operand.hbm [shape: f32[8,128], index: 5, kind: output, shape index: {}]  }
   0x1   :  { %s10_s20 = sshll.u32 %s1443_s0, 4  ;;  %s11_s20 = int_to_ptr.vmem [resolvable:$true] %s10_s20 }
   0x2   :  { %s1084_s21 = scalar_lea.vmem %s11_s20, 16  ;;  %p1089_p1 = scmp.lt.s32.totalorder %s11_s20, %s11_s20 }
   0x3   :  { %p1085_p0 = scmp.ne.s32.totalorder %s11_s20, %s1084_s21  ;;  %p1090_p2 = scmp.lt.s32.totalorder %s1084_s21, %s1084_s21 }
   0x5   :  { %p1091_p3 = por %p1090_p2, %p1089_p1 }
   0x7   :  { %p1092_p4 = pnand %p1091_p3, %p1085_p0 }
   0x9   :  { %1095 = shalt.err (!%p1092_p4)  }
   0xa   :  { %s1142_s22 = smov [#allocation4]  }
   0xb   :  { %13 = dma.vmem_to_smem %s11_s20, 16, %s1142_s22, [#allocation3] }
   0xc   :  { %1136 = dma.done.wait [#allocation3], 16 }
   0xd   :  { %1137 = vsyncadd [#allocation3], 4294967280 }
   0xe   :  { %15 = sfence }
   0xf   :  { %16 = vsyncpa [#allocation6], 0 }
  0x10   :  { %17 = vsyncpa [#allocation7], 0  ;;  %s1143_s23 = smov [#allocation5]  }
  0x11   :  { %s27_s24 = sshll.u32 %s1143_s23, 4  ;;  %s28_s24 = int_to_ptr.vmem [resolvable:$true] %s27_s24 }
  0x12   :  { %s1104_s25 = scalar_lea.vmem %s28_s24, 2048  ;;  %p1109_p6 = scmp.lt.s32.totalorder %s28_s24, %s28_s24 }
  0x13   :  { %p1105_p5 = scmp.ne.s32.totalorder %s28_s24, %s1104_s25  ;;  %p1110_p7 = scmp.lt.s32.totalorder %s1104_s25, %s1104_s25 }
  0x15   :  { %p1111_p8 = por %p1110_p7, %p1109_p6 }
  0x17   :  { %p1112_p9 = pnand %p1111_p8, %p1105_p5 }
  0x19   :  { %1115 = shalt.err (!%p1112_p9)
}
  0x1a   :  { %s1144_s0 = smov 64   ;;  %s1145_s26 = smov 4  }
  0x1b   :  { %33 = dma.hbm_to_vmem [thread:$0]  %s1446_s3, 2048, %s28_s24, [#allocation6], %s1144_s0, %s1144_s0, %s1145_s26  }
  0x1c   :  { %1138 = dma.done.wait [#allocation6], 2048  }
  0x1d   :  { %1139 = vsyncadd [#allocation6], 4294965248  ;;  %v1184_v0 = vld [vmem:[#allocation5 + $0x78] sm:$0xff]   ;;  %v1189_v2 = vld [vmem:[#allocation5 + $0x70] sm:$0xff]   ;;  %s86_s3 = sld [smem:[#allocation4]]  ;;  %vm46_vm0 = vcmask 1040384   ;;  %v108_v20 = vlaneseq }
  0x1e   :  { %v1186_v1 = vld [vmem:[#allocation5 + $0x38] sm:$0xff]   ;;  %870 = vmatprep.subr.bf16.mxu0 %v1184_v0  ;;  %892 = vmatprep.subr.bf16.mxu1 %v1184_v0  ;;  %v1193_v3 = vld [vmem:[#allocation5 + $0x30] sm:$0xff]   ;;  %v1197_v4 = vld [vmem:[#allocation5 + $0x68] sm:$0xff]   ;;  %vm47_vm1 = vsmask.f32 256  ;;  %s860_s17 = sld [smem:[#allocation4 + $0x3]] }
  0x1f   :  { %871 = vmatpush3.bf16.msra.mxu0 %v1186_v1  ;;  %893 = vmatpush3.bf16.msra.mxu1 %v1186_v1  ;;  %v1201_v5 = vld [vmem:[#allocation5 + $0x28] sm:$0xff]   ;;  %v1205_v6 = vld [vmem:[#allocation5 + $0x60] sm:$0xff]   ;;  %v1213_v8 = vld [vmem:[#allocation5 + $0x58] sm:$0xff]   ;;  %v1146_v18 = vmov 1966171168   ;;  %v109_v25 = vshrl.u32 %v108_v20, 7 }
  0x20   :  { %872 = vmatprep.subr.bf16.mxu0 %v1189_v2  ;;  %894 = vmatprep.subr.bf16.mxu1 %v1189_v2  ;;  %v1209_v7 = vld [vmem:[#allocation5 + $0x20] sm:$0xff]   ;;  %vm1216_vm2 = vmand %vm46_vm0, %vm47_vm1  ;;  %v1223_v10 = vld [vmem:[#allocation5 + $0x18] sm:$0xff]   ;;  %v106_v19 = vunpack.c.l.s4 %v1146_v18  ;;  %s862_s21 = sld [smem:[#allocation4 + $0x4]] }
  0x21   :  { %v1226_v11 = vld [vmem:[#allocation5 + $0x50] sm:$0xff]   ;;  %v44_v12 = vld [vmem:[%s1445_s2] sm:$0x1]  ;;  %v49_v13 = vld [vmem:[#allocation2 + $0x1] sm:$0x1]  ;;  %s856_s2 = sld [smem:[#allocation4 + $0x1]] }
  0x22   :  { %v45_v15 = vpack.c.bf16 %v44_v12, %v44_v12  ;;  %v92_v16 = vld [vmem:[#allocation2] sm:$0x1]  ;;  %v1237_v21 = vld [vmem:[#allocation5 + $0x10] sm:$0xff]   ;;  %v1243_v23 = vld [vmem:[#allocation5 + $0x48] sm:$0xff]   ;;  %v107_v24 = vunpack.c.0.s8 %v106_v19  ;;  %s864_s25 = sld [smem:[#allocation4 + $0x5]] }
  0x23   :  { %873 = vmatpush3.bf16.msra.mxu0 %v1193_v3  ;;  %895 = vmatpush3.bf16.msra.mxu1 %v1193_v3  ;;  %s87_s6 = scalar_lea.vmem %s1444_s1, %s86_s3  ;;  %v1247_v26 = vld [vmem:[#allocation5 + $0x8] sm:$0xff]   ;;  %v1251_v27 = vld [vmem:[#allocation5 + $0x40] sm:$0xff]   ;;  %v1292_v38 = vld [vmem:[%s1447_s4] sm:$0x1]  ;;  %s858_s4 = sld [smem:[#allocation4 + $0x2]] }
  0x24   :  { %874 = vmatprep.subr.bf16.mxu0 %v1197_v4  ;;  %896 = vmatprep.subr.bf16.mxu1 %v1197_v4  ;;  %v88_v14 = vld [vmem:[%s87_s6] sm:$0x1]  ;;  %v50_v22 = vsel %vm1216_vm2, %v45_v15, %v49_v13  ;;  %v1254_v28 = vsub.s32 %v107_v24, %v109_v25  ;;  %v1257_v29 = vld [vmem:[#allocation5] sm:$0xff]   ;;  %s423_s20 = scalar_lea.vmem %s1444_s1, %s860_s17  ;;  %s866_s28 = sld [smem:[#allocation4 + $0x6]] }
  0x25   :  { %v93_v17 = vsel %vm1216_vm2, %v88_v14, %v92_v16  ;;  %51 = vst [vmem:[#allocation2 + $0x1] sm:$0x1] %v50_v22  ;;  %s868_s6 = sld [smem:[#allocation4 + $0x7]] }
  0x26   :  { %94 = vst [vmem:[#allocation2] sm:$0x1] %v93_v17  ;;  %v424_v17 = vld [vmem:[%s423_s20] sm:$0x1]  ;;  %s502_s24 = scalar_lea.vmem %s1444_s1, %s862_s21 }
  0x27   :  { %875 = vmatpush3.bf16.msra.mxu0 %v1201_v5  ;;  %897 = vmatpush3.bf16.msra.mxu1 %v1201_v5  ;;  %s265_s11 = scalar_lea.vmem %s1444_s1, %s856_s2 }
  0x28   :  { %876 = vmatprep.subr.bf16.mxu0 %v1205_v6  ;;  %898 = vmatprep.subr.bf16.mxu1 %v1205_v6  ;;  %v266_v34 = vld [vmem:[%s265_s11] sm:$0x1]  ;;  %s581_s27 = scalar_lea.vmem %s1444_s1, %s864_s25 }
  0x29   :  { %s344_s16 = scalar_lea.vmem %s1444_s1, %s858_s4 }
  0x2a   :  { %v345_v52 = vld [vmem:[%s344_s16] sm:$0x1]  ;;  %s660_s30 = scalar_lea.vmem %s1444_s1, %s866_s28 }
  0x2b   :  { %877 = vmatpush3.bf16.msra.mxu0 %v1209_v7  ;;  %899 = vmatpush3.bf16.msra.mxu1 %v1209_v7  ;;  %s739_s2 = scalar_lea.vmem %s1444_s1, %s868_s6  ;;  %s1147_s1 = smov [#allocation8]  }
  0x2c   :  { %878 = vmatprep.subr.bf16.mxu0 %v1213_v8  ;;  %900 = vmatprep.subr.bf16.mxu1 %v1213_v8  ;;  %v259_v45 = vld [vmem:[#allocation2 + $0x1] sm:$0x1]  ;;  %s822_s9 = sshll.u32 %s1147_s1, 4  ;;  %s823_s9 = int_to_ptr.vmem [resolvable:$true] %s822_s9 }
  0x2d   :  { %v839_v30 = vld.sshfl [vmem:[#allocation2] sm:$0x11 pattern:$0x75316420]  ;;  %s1116_s10 = scalar_lea.vmem %s823_s9, 128  ;;  %p1121_p11 = scmp.lt.s32.totalorder %s823_s9, %s823_s9 }
  0x2e   :  { %v104_v31 = vcombine.high %v839_v30, %v839_v30  ;;  %v111_v33 = vrot.slane %v839_v30, %v1254_v28  ;;  %v267_v35 = vld [vmem:[#allocation2] sm:$0x1]  ;;  %p1117_p10 = scmp.ne.s32.totalorder %s823_s9, %s1116_s10  ;;  %p1122_p12 = scmp.lt.s32.totalorder %s1116_s10, %s1116_s10 }
  0x2f   :  { %879 = vmatpush3.bf16.msra.mxu0 %v1223_v10  ;;  %901 = vmatpush3.bf16.msra.mxu1 %v1223_v10  ;;  %v268_v36 = vsel %vm1216_vm2, %v266_v34, %v267_v35 }
  0x30   :  { %880 = vmatprep.subr.bf16.mxu0 %v1226_v11  ;;  %902 = vmatprep.subr.bf16.mxu1 %v1226_v11  ;;  %v118_v32 = vrot.slane %v104_v31, %v1254_v28  ;;  %269 = vst [vmem:[#allocation2] sm:$0x1] %v268_v36  ;;  %p1123_p13 = por %p1122_p12, %p1121_p11 }
  0x32   :  { %249 = vmatprep.mubr.bf16.mxu0 %v118_v32  ;;  %p1124_p0 = pnand %p1123_p13, %p1117_p10 }
  0x33   :  { %881 = vmatpush3.bf16.msra.mxu0 %v1237_v21  ;;  %903 = vmatpush3.bf16.msra.mxu1 %v1237_v21 }
  0x34   :  { %882 = vmatprep.subr.bf16.mxu0 %v1243_v23  ;;  %904 = vmatprep.subr.bf16.mxu1 %v1243_v23 }
  0x37   :  { %883 = vmatpush3.bf16.msra.mxu0 %v1247_v26  ;;  %905 = vmatpush3.bf16.msra.mxu1 %v1247_v26  ;;  %v346_v53 = vld [vmem:[#allocation2] sm:$0x1] }
  0x38   :  { %884 = vmatprep.subr.bf16.mxu0 %v1251_v27  ;;  %906 = vmatprep.subr.bf16.mxu1 %v1251_v27  ;;  %v347_v54 = vsel %vm1216_vm2, %v345_v52, %v346_v53  ;;  %v582_v53 = vld [vmem:[%s581_s27] sm:$0x1] }
  0x3b   :  { %885 = vmatpush3.bf16.msra.mxu0 %v1257_v29  ;;  %907 = vmatpush3.bf16.msra.mxu1 %v1257_v29 }
  0x3c   :  { %914 = vmatprep.subr.bf16.mxu0 %v1184_v0  ;;  %936 = vmatprep.subr.bf16.mxu1 %v1184_v0 }
  0x3e   :  { %250 = vmatmul.mubr.bf16.vlgmr.msra.gmra.mxu0 %v111_v33 }
  0x3f   :  { %915 = vmatpush3.bf16.msra.mxu0 %v1186_v1 }
  0x40   :  { %916 = vmatprep.subr.bf16.mxu0 %v1189_v2 }
  0x43   :  { %917 = vmatpush3.bf16.msra.mxu0 %v1193_v3 }
  0x44   :  { %918 = vmatprep.subr.bf16.mxu0 %v1197_v4 }
  0x47   :  { %919 = vmatpush3.bf16.msra.mxu0 %v1201_v5 }
  0x48   :  { %920 = vmatprep.subr.bf16.mxu0 %v1205_v6 }
  0x4b   :  { %921 = vmatpush3.bf16.msra.mxu0 %v1209_v7 }
  0x4c   :  { %922 = vmatprep.subr.bf16.mxu0 %v1213_v8 }
  0x4f   :  { %923 = vmatpush3.bf16.msra.mxu0 %v1223_v10 }
  0x50   :  { %924 = vmatprep.subr.bf16.mxu0 %v1226_v11 }
  0x53   :  { %925 = vmatpush3.bf16.msra.mxu0 %v1237_v21 }
  0x54   :  { %926 = vmatprep.subr.bf16.mxu0 %v1243_v23 }
  0x57   :  { %927 = vmatpush3.bf16.msra.mxu0 %v1247_v26 }
  0x58   :  { %928 = vmatprep.subr.bf16.mxu0 %v1251_v27 }
  0x5b   :  { %929 = vmatpush3.bf16.msra.mxu0 %v1257_v29 }
  0x5c   :  { %958 = vmatprep.subr.bf16.mxu0 %v1184_v0 }
  0xfe   :  { %v886_v37 = vpop.f32.mrf.mxu0 }
 0x100   :  { %v887_v39 = vpop.f32.mrf.mxu0 }
 0x101   :  { %v888_v40 = vadd.f32 %v887_v39, %v886_v37 }
 0x102   :  { %v889_v41 = vpop.f32.mrf.mxu0 }
 0x103   :  { %v252_v42 = vadd.f32 %v888_v40, %v1292_v38  ;;  %v503_v41 = vld [vmem:[%s502_s24] sm:$0x1] }
 0x104   :  { %v890_v43 = vpop.f32.mrf.mxu0 }
 0x105   :  { %1068 = vtanh.f32 %v252_v42 }
 0x112   :  { %v1069_v44 = vpop.eup %1068 }
 0x113   :  { %v258_v46 = vpack.c.bf16 %v1069_v44, %v1069_v44  ;;  %262 = vst [vmem:[#allocation8] sm:$0x1] %v1069_v44 }
 0x115   :  { %v260_v47 = vsel %vm1216_vm2, %v258_v46, %v259_v45 }
 0x116   :  { %261 = vst [vmem:[#allocation2 + $0x1] sm:$0x1] %v260_v47 }
 0x11d   :  { %v857_v48 = vld.sshfl [vmem:[#allocation2] sm:$0x11 pattern:$0x75316420] }
 0x11e   :  { %v279_v49 = vcombine.high %v857_v48, %v857_v48  ;;  %v286_v51 = vrot.slane %v857_v48, %v1254_v28  ;;  %348 = vst [vmem:[#allocation2] sm:$0x1] %v347_v54  ;;  %v338_v63 = vld [vmem:[#allocation2 + $0x1] sm:$0x1] }
 0x120   :  { %v293_v50 = vrot.slane %v279_v49, %v1254_v28 }
 0x122   :  { %328 = vmatprep.mubr.bf16.mxu1 %v293_v50 }
 0x123   :  { %329 = vmatmul.mubr.bf16.vlgmr.msra.gmra.mxu1 %v286_v51 }
 0x124   :  { %937 = vmatpush3.bf16.msra.mxu1 %v1186_v1 }
 0x125   :  { %938 = vmatprep.subr.bf16.mxu1 %v1189_v2  ;;  %v425_v18 = vld [vmem:[#allocation2] sm:$0x1] }
 0x126   :  { %v426_v19 = vsel %vm1216_vm2, %v424_v17, %v425_v18  ;;  %v661_v18 = vld [vmem:[%s660_s30] sm:$0x1] }
 0x128   :  { %939 = vmatpush3.bf16.msra.mxu1 %v1193_v3 }
 0x129   :  { %940 = vmatprep.subr.bf16.mxu1 %v1197_v4 }
 0x12c   :  { %941 = vmatpush3.bf16.msra.mxu1 %v1201_v5 }
 0x12d   :  { %942 = vmatprep.subr.bf16.mxu1 %v1205_v6 }
 0x130   :  { %943 = vmatpush3.bf16.msra.mxu1 %v1209_v7 }
 0x131   :  { %944 = vmatprep.subr.bf16.mxu1 %v1213_v8 }
 0x134   :  { %945 = vmatpush3.bf16.msra.mxu1 %v1223_v10 }
 0x135   :  { %946 = vmatprep.subr.bf16.mxu1 %v1226_v11 }
 0x138   :  { %947 = vmatpush3.bf16.msra.mxu1 %v1237_v21 }
 0x139   :  { %948 = vmatprep.subr.bf16.mxu1 %v1243_v23 }
 0x13c   :  { %949 = vmatpush3.bf16.msra.mxu1 %v1247_v26 }
 0x13d   :  { %950 = vmatprep.subr.bf16.mxu1 %v1251_v27 }
 0x140   :  { %951 = vmatpush3.bf16.msra.mxu1 %v1257_v29 }
 0x141   :  { %980 = vmatprep.subr.bf16.mxu1 %v1184_v0 }
 0x1e3   :  { %v908_v55 = vpop.f32.mrf.mxu1 }
 0x1e5   :  { %v909_v56 = vpop.f32.mrf.mxu1 }
 0x1e6   :  { %v910_v57 = vadd.f32 %v909_v56, %v908_v55 }
 0x1e7   :  { %v911_v58 = vpop.f32.mrf.mxu1 }
 0x1e8   :  { %v331_v59 = vadd.f32 %v910_v57, %v1292_v38 }
 0x1e9   :  { %v912_v60 = vpop.f32.mrf.mxu1 }
 0x1ea   :  { %1070 = vtanh.f32 %v331_v59 }
 0x1f7   :  { %v1071_v61 = vpop.eup %1070 }
 0x1f8   :  { %v337_v62 = vpack.c.bf16 %v1071_v61, %v1071_v61  ;;  %341 = vst [vmem:[#allocation8 + $0x1] sm:$0x1] %v1071_v61 }
 0x1fa   :  { %v339_v12 = vsel %vm1216_vm2, %v337_v62, %v338_v63 }
 0x1fb   :  { %340 = vst [vmem:[#allocation2 + $0x1] sm:$0x1] %v339_v12 }
 0x202   :  { %v859_v13 = vld.sshfl [vmem:[#allocation2] sm:$0x11 pattern:$0x75316420] }
 0x203   :  { %v358_v14 = vcombine.high %v859_v13, %v859_v13  ;;  %v365_v16 = vrot.slane %v859_v13, %v1254_v28  ;;  %427 = vst [vmem:[#allocation2] sm:$0x1] %v426_v19  ;;  %v417_v34 = vld [vmem:[#allocation2 + $0x1] sm:$0x1] }
 0x205   :  { %v372_v15 = vrot.slane %v358_v14, %v1254_v28 }
 0x207   :  { %407 = vmatprep.mubr.bf16.mxu0 %v372_v15 }
 0x208   :  { %408 = vmatmul.mubr.bf16.vlgmr.msra.gmra.mxu0 %v365_v16 }
 0x209   :  { %959 = vmatpush3.bf16.msra.mxu0 %v1186_v1 }
 0x20a   :  { %960 = vmatprep.subr.bf16.mxu0 %v1189_v2  ;;  %v504_v42 = vld [vmem:[#allocation2] sm:$0x1] }
 0x20b   :  { %v505_v43 = vsel %vm1216_vm2, %v503_v41, %v504_v42 }
 0x20d   :  { %961 = vmatpush3.bf16.msra.mxu0 %v1193_v3 }
 0x20e   :  { %962 = vmatprep.subr.bf16.mxu0 %v1197_v4 }
 0x211   :  { %963 = vmatpush3.bf16.msra.mxu0 %v1201_v5 }
 0x212   :  { %964 = vmatprep.subr.bf16.mxu0 %v1205_v6 }
 0x215   :  { %965 = vmatpush3.bf16.msra.mxu0 %v1209_v7 }
 0x216   :  { %966 = vmatprep.subr.bf16.mxu0 %v1213_v8 }
 0x219   :  { %967 = vmatpush3.bf16.msra.mxu0 %v1223_v10 }
 0x21a   :  { %968 = vmatprep.subr.bf16.mxu0 %v1226_v11 }
 0x21d   :  { %969 = vmatpush3.bf16.msra.mxu0 %v1237_v21 }
 0x21e   :  { %970 = vmatprep.subr.bf16.mxu0 %v1243_v23 }
 0x221   :  { %971 = vmatpush3.bf16.msra.mxu0 %v1247_v26 }
 0x222   :  { %972 = vmatprep.subr.bf16.mxu0 %v1251_v27 }
 0x225   :  { %973 = vmatpush3.bf16.msra.mxu0 %v1257_v29 }
 0x226   :  { %1002 = vmatprep.subr.bf16.mxu0 %v1184_v0 }
 0x2c8   :  { %v930_v20 = vpop.f32.mrf.mxu0 }
 0x2ca   :  { %v931_v22 = vpop.f32.mrf.mxu0 }
 0x2cb   :  { %v932_v24 = vadd.f32 %v931_v22, %v930_v20 }
 0x2cc   :  { %v933_v25 = vpop.f32.mrf.mxu0 }
 0x2cd   :  { %v410_v30 = vadd.f32 %v932_v24, %v1292_v38 }
 0x2ce   :  { %v934_v31 = vpop.f32.mrf.mxu0 }
 0x2cf   :  { %1072 = vtanh.f32 %v410_v30 }
 0x2dc   :  { %v1073_v32 = vpop.eup %1072 }
 0x2dd   :  { %v416_v33 = vpack.c.bf16 %v1073_v32, %v1073_v32  ;;  %420 = vst [vmem:[#allocation8 + $0x2] sm:$0x1] %v1073_v32 }
 0x2df   :  { %v418_v35 = vsel %vm1216_vm2, %v416_v33, %v417_v34 }
 0x2e0   :  { %419 = vst [vmem:[#allocation2 + $0x1] sm:$0x1] %v418_v35 }
 0x2e7   :  { %v861_v36 = vld.sshfl [vmem:[#allocation2] sm:$0x11 pattern:$0x75316420] }
 0x2e8   :  { %v437_v37 = vcombine.high %v861_v36, %v861_v36  ;;  %v444_v40 = vrot.slane %v861_v36, %v1254_v28  ;;  %506 = vst [vmem:[#allocation2] sm:$0x1] %v505_v43  ;;  %v496_v51 = vld [vmem:[#allocation2 + $0x1] sm:$0x1] }
 0x2ea   :  { %v451_v39 = vrot.slane %v437_v37, %v1254_v28 }
 0x2ec   :  { %486 = vmatprep.mubr.bf16.mxu1 %v451_v39 }
 0x2ed   :  { %487 = vmatmul.mubr.bf16.vlgmr.msra.gmra.mxu1 %v444_v40 }
 0x2ee   :  { %981 = vmatpush3.bf16.msra.mxu1 %v1186_v1 }
 0x2ef   :  { %982 = vmatprep.subr.bf16.mxu1 %v1189_v2  ;;  %v583_v54 = vld [vmem:[#allocation2] sm:$0x1] }
 0x2f0   :  { %v584_v55 = vsel %vm1216_vm2, %v582_v53, %v583_v54 }
 0x2f2   :  { %983 = vmatpush3.bf16.msra.mxu1 %v1193_v3 }
 0x2f3   :  { %984 = vmatprep.subr.bf16.mxu1 %v1197_v4 }
 0x2f6   :  { %985 = vmatpush3.bf16.msra.mxu1 %v1201_v5 }
 0x2f7   :  { %986 = vmatprep.subr.bf16.mxu1 %v1205_v6 }
 0x2fa   :  { %987 = vmatpush3.bf16.msra.mxu1 %v1209_v7 }
 0x2fb   :  { %988 = vmatprep.subr.bf16.mxu1 %v1213_v8 }
 0x2fe   :  { %989 = vmatpush3.bf16.msra.mxu1 %v1223_v10 }
 0x2ff   :  { %990 = vmatprep.subr.bf16.mxu1 %v1226_v11 }
 0x302   :  { %991 = vmatpush3.bf16.msra.mxu1 %v1237_v21 }
 0x303   :  { %992 = vmatprep.subr.bf16.mxu1 %v1243_v23 }
 0x306   :  { %993 = vmatpush3.bf16.msra.mxu1 %v1247_v26 }
 0x307   :  { %994 = vmatprep.subr.bf16.mxu1 %v1251_v27 }
 0x30a   :  { %995 = vmatpush3.bf16.msra.mxu1 %v1257_v29 }
 0x30b   :  { %1024 = vmatprep.subr.bf16.mxu1 %v1184_v0 }
 0x3ad   :  { %v952_v44 = vpop.f32.mrf.mxu1 }
 0x3af   :  { %v953_v45 = vpop.f32.mrf.mxu1 }
 0x3b0   :  { %v954_v46 = vadd.f32 %v953_v45, %v952_v44 }
 0x3b1   :  { %v955_v47 = vpop.f32.mrf.mxu1 }
 0x3b2   :  { %v489_v48 = vadd.f32 %v954_v46, %v1292_v38 }
 0x3b3   :  { %v956_v49 = vpop.f32.mrf.mxu1 }
 0x3b4   :  { %1074 = vtanh.f32 %v489_v48 }
 0x3c1   :  { %v1075_v0 = vpop.eup %1074 }
 0x3c2   :  { %v495_v50 = vpack.c.bf16 %v1075_v0, %v1075_v0  ;;  %499 = vst [vmem:[#allocation8 + $0x3] sm:$0x1] %v1075_v0 }
 0x3c4   :  { %v497_v52 = vsel %vm1216_vm2, %v495_v50, %v496_v51 }
 0x3c5   :  { %498 = vst [vmem:[#allocation2 + $0x1] sm:$0x1] %v497_v52 }
 0x3cc   :  { %v863_v56 = vld.sshfl [vmem:[#allocation2] sm:$0x11 pattern:$0x75316420] }
 0x3cd   :  { %v516_v57 = vcombine.high %v863_v56, %v863_v56  ;;  %585 = vst [vmem:[#allocation2] sm:$0x1] %v584_v55  ;;  %v523_v59 = vrot.slane %v863_v56, %v1254_v28  ;;  %v575_v16 = vld [vmem:[#allocation2 + $0x1] sm:$0x1] }
 0x3cf   :  { %v530_v58 = vrot.slane %v516_v57, %v1254_v28 }
 0x3d1   :  { %565 = vmatprep.mubr.bf16.mxu0 %v530_v58 }
 0x3d2   :  { %566 = vmatmul.mubr.bf16.vlgmr.msra.gmra.mxu0 %v523_v59 }
 0x3d3   :  { %1003 = vmatpush3.bf16.msra.mxu0 %v1186_v1 }
 0x3d4   :  { %1004 = vmatprep.subr.bf16.mxu0 %v1189_v2  ;;  %v662_v19 = vld [vmem:[#allocation2] sm:$0x1] }
 0x3d5   :  { %v663_v20 = vsel %vm1216_vm2, %v661_v18, %v662_v19 }
 0x3d7   :  { %1005 = vmatpush3.bf16.msra.mxu0 %v1193_v3 }
 0x3d8   :  { %1006 = vmatprep.subr.bf16.mxu0 %v1197_v4 }
 0x3db   :  { %1007 = vmatpush3.bf16.msra.mxu0 %v1201_v5 }
 0x3dc   :  { %1008 = vmatprep.subr.bf16.mxu0 %v1205_v6 }
 0x3df   :  { %1009 = vmatpush3.bf16.msra.mxu0 %v1209_v7 }
 0x3e0   :  { %1010 = vmatprep.subr.bf16.mxu0 %v1213_v8 }
 0x3e3   :  { %1011 = vmatpush3.bf16.msra.mxu0 %v1223_v10 }
 0x3e4   :  { %1012 = vmatprep.subr.bf16.mxu0 %v1226_v11 }
 0x3e7   :  { %1013 = vmatpush3.bf16.msra.mxu0 %v1237_v21 }
 0x3e8   :  { %1014 = vmatprep.subr.bf16.mxu0 %v1243_v23 }
 0x3eb   :  { %1015 = vmatpush3.bf16.msra.mxu0 %v1247_v26 }
 0x3ec   :  { %1016 = vmatprep.subr.bf16.mxu0 %v1251_v27 }
 0x3ef   :  { %1017 = vmatpush3.bf16.msra.mxu0 %v1257_v29 }
 0x492   :  { %v974_v60 = vpop.f32.mrf.mxu0 }
 0x494   :  { %v975_v61 = vpop.f32.mrf.mxu0 }
 0x495   :  { %v976_v62 = vadd.f32 %v975_v61, %v974_v60 }
 0x496   :  { %v977_v63 = vpop.f32.mrf.mxu0 }
 0x497   :  { %v568_v12 = vadd.f32 %v976_v62, %v1292_v38 }
 0x498   :  { %v978_v13 = vpop.f32.mrf.mxu0 }
 0x499   :  { %1076 = vtanh.f32 %v568_v12 }
 0x4a6   :  { %v1077_v14 = vpop.eup %1076 }
 0x4a7   :  { %v574_v15 = vpack.c.bf16 %v1077_v14, %v1077_v14  ;;  %578 = vst [vmem:[#allocation8 + $0x4] sm:$0x1] %v1077_v14 }
 0x4a9   :  { %v576_v17 = vsel %vm1216_vm2, %v574_v15, %v575_v16 }
 0x4aa   :  { %577 = vst [vmem:[#allocation2 + $0x1] sm:$0x1] %v576_v17 }
 0x4b1   :  { %v865_v22 = vld.sshfl [vmem:[#allocation2] sm:$0x11 pattern:$0x75316420] }
 0x4b2   :  { %v595_v24 = vcombine.high %v865_v22, %v865_v22  ;;  %664 = vst [vmem:[#allocation2] sm:$0x1] %v663_v20  ;;  %v602_v30 = vrot.slane %v865_v22, %v1254_v28 }
 0x4b4   :  { %v609_v25 = vrot.slane %v595_v24, %v1254_v28 }
 0x4b6   :  { %644 = vmatprep.mubr.bf16.mxu1 %v609_v25 }
 0x4b7   :  { %645 = vmatmul.mubr.bf16.vlgmr.msra.gmra.mxu1 %v602_v30 }
 0x4b8   :  { %1025 = vmatpush3.bf16.msra.mxu1 %v1186_v1 }
 0x4b9   :  { %1026 = vmatprep.subr.bf16.mxu1 %v1189_v2 }
 0x4bc   :  { %1027 = vmatpush3.bf16.msra.mxu1 %v1193_v3 }
 0x4bd   :  { %1028 = vmatprep.subr.bf16.mxu1 %v1197_v4 }
 0x4c0   :  { %1029 = vmatpush3.bf16.msra.mxu1 %v1201_v5 }
 0x4c1   :  { %1030 = vmatprep.subr.bf16.mxu1 %v1205_v6 }
 0x4c4   :  { %1031 = vmatpush3.bf16.msra.mxu1 %v1209_v7 }
 0x4c5   :  { %1032 = vmatprep.subr.bf16.mxu1 %v1213_v8 }
 0x4c8   :  { %1033 = vmatpush3.bf16.msra.mxu1 %v1223_v10  ;;  %v654_v10 = vld [vmem:[#allocation2 + $0x1] sm:$0x1] }
 0x4c9   :  { %1034 = vmatprep.subr.bf16.mxu1 %v1226_v11 }
 0x4cc   :  { %1035 = vmatpush3.bf16.msra.mxu1 %v1237_v21  ;;  %v740_v21 = vld [vmem:[%s739_s2] sm:$0x1] }
 0x4cd   :  { %1036 = vmatprep.subr.bf16.mxu1 %v1243_v23  ;;  %v741_v23 = vld [vmem:[#allocation2] sm:$0x1] }
 0x4d0   :  { %1037 = vmatpush3.bf16.msra.mxu1 %v1247_v26  ;;  %v742_v26 = vsel %vm1216_vm2, %v740_v21, %v741_v23 }
 0x4d1   :  { %1038 = vmatprep.subr.bf16.mxu1 %v1251_v27 }
 0x4d4   :  { %1039 = vmatpush3.bf16.msra.mxu1 %v1257_v29 }
 0x577   :  { %v996_v1 = vpop.f32.mrf.mxu1 }
 0x579   :  { %v997_v2 = vpop.f32.mrf.mxu1 }
 0x57a   :  { %v998_v3 = vadd.f32 %v997_v2, %v996_v1 }
 0x57b   :  { %v999_v4 = vpop.f32.mrf.mxu1 }
 0x57c   :  { %v647_v5 = vadd.f32 %v998_v3, %v1292_v38 }
 0x57d   :  { %v1000_v6 = vpop.f32.mrf.mxu1 }
 0x57e   :  { %1078 = vtanh.f32 %v647_v5 }
 0x58b   :  { %v1079_v7 = vpop.eup %1078 }
 0x58c   :  { %v653_v8 = vpack.c.bf16 %v1079_v7, %v1079_v7  ;;  %657 = vst [vmem:[#allocation8 + $0x5] sm:$0x1] %v1079_v7 }
 0x58e   :  { %v655_v11 = vsel %vm1216_vm2, %v653_v8, %v654_v10 }
 0x58f   :  { %656 = vst [vmem:[#allocation2 + $0x1] sm:$0x1] %v655_v11 }
 0x596   :  { %v867_v27 = vld.sshfl [vmem:[#allocation2] sm:$0x11 pattern:$0x75316420] }
 0x597   :  { %v674_v29 = vcombine.high %v867_v27, %v867_v27  ;;  %743 = vst [vmem:[#allocation2] sm:$0x1] %v742_v26  ;;  %v681_v32 = vrot.slane %v867_v27, %v1254_v28  ;;  %v733_v42 = vld [vmem:[#allocation2 + $0x1] sm:$0x1] }
 0x599   :  { %v688_v31 = vrot.slane %v674_v29, %v1254_v28 }
 0x59b   :  { %723 = vmatprep.mubr.bf16.mxu0 %v688_v31 }
 0x59c   :  { %724 = vmatmul.mubr.bf16.vlgmr.msra.gmra.mxu0 %v681_v32 }
 0x65c   :  { %v1018_v33 = vpop.f32.mrf.mxu0 }
 0x65e   :  { %v1019_v34 = vpop.f32.mrf.mxu0 }
 0x65f   :  { %v1020_v35 = vadd.f32 %v1019_v34, %v1018_v33 }
 0x660   :  { %v1021_v36 = vpop.f32.mrf.mxu0 }
 0x661   :  { %v726_v37 = vadd.f32 %v1020_v35, %v1292_v38 }
 0x662   :  { %v1022_v39 = vpop.f32.mrf.mxu0 }
 0x663   :  { %1080 = vtanh.f32 %v726_v37 }
 0x670   :  { %v1081_v40 = vpop.eup %1080 }
 0x671   :  { %v732_v41 = vpack.c.bf16 %v1081_v40, %v1081_v40  ;;  %736 = vst [vmem:[#allocation8 + $0x6] sm:$0x1] %v1081_v40 }
 0x673   :  { %v734_v43 = vsel %vm1216_vm2, %v732_v41, %v733_v42 }
 0x674   :  { %735 = vst [vmem:[#allocation2 + $0x1] sm:$0x1] %v734_v43 }
 0x67b   :  { %v869_v44 = vld.sshfl [vmem:[#allocation2] sm:$0x11 pattern:$0x75316420] }
 0x67c   :  { %v753_v45 = vcombine.high %v869_v44, %v869_v44  ;;  %v760_v47 = vrot.slane %v869_v44, %v1254_v28  ;;  %v812_v55 = vld [vmem:[#allocation2 + $0x1] sm:$0x1] }
 0x67e   :  { %v767_v46 = vrot.slane %v753_v45, %v1254_v28 }
 0x680   :  { %802 = vmatprep.mubr.bf16.mxu1 %v767_v46 }
 0x681   :  { %803 = vmatmul.mubr.bf16.vlgmr.msra.gmra.mxu1 %v760_v47 }
 0x741   :  { %v1040_v48 = vpop.f32.mrf.mxu1 }
 0x743   :  { %v1041_v49 = vpop.f32.mrf.mxu1 }
 0x744   :  { %v1042_v0 = vadd.f32 %v1041_v49, %v1040_v48 }
 0x745   :  { %v1043_v50 = vpop.f32.mrf.mxu1 }
 0x746   :  { %v805_v51 = vadd.f32 %v1042_v0, %v1292_v38 }
 0x747   :  { %v1044_v52 = vpop.f32.mrf.mxu1 }
 0x748   :  { %1082 = vtanh.f32 %v805_v51 }
 0x755   :  { %v1083_v53 = vpop.eup %1082 }
 0x756   :  { %v811_v54 = vpack.c.bf16 %v1083_v53, %v1083_v53  ;;  %815 = vst [vmem:[#allocation8 + $0x7] sm:$0x1] %v1083_v53 }
 0x757   :  { %1127 = shalt.err (!%p1124_p0)
}
 0x758   :  { %825 = dma.vmem_to_hbm [thread:$0]  %s823_s9, 128, %s1448_s5, [#allocation7]   ;;  %v813_v28 = vsel %vm1216_vm2, %v811_v54, %v812_v55 }
 0x759   :  { %814 = vst [vmem:[#allocation2 + $0x1] sm:$0x1] %v813_v28 }
 0x75a   :  { %1140 = dma.done.wait [#allocation7], 128  }
 0x75b   :  { %1141 = vsyncadd [#allocation7], 4294967168 }
 0x75c   :  { %829 = vsyncpa [#allocation6], 1 }
 0x75d   :  { %830 = vsyncpa [#allocation7], 1 }

</bundles_post_ra>
